<compile_context>
chip_gen: v7x
topology: tpu7x:2x2x1
jax: 0.10.0
libtpu: 0.0.40
codegen_flags: <defaults>
</compile_context>

<pallas_src>
import jax
import jax.numpy as jnp
from jax import lax
from jax.experimental import pallas as pl
from jax.experimental.pallas import tpu as pltpu


_ONEHOT_MAX_ITEMS = 2048   # vocab size up to which the MXU one-hot gather wins
_N_INFLIGHT = 8            # outstanding row DMAs in the HBM gather path


def _round_up(x, m):
    return ((x + m - 1) // m) * m


def _vmem_capacity_bytes():
    """Generation-aware VMEM capacity (per TensorCore), with a safe fallback."""
    try:
        cap = int(pltpu.get_tpu_info().vmem_capacity_bytes)
        if cap > 0:
            return cap
    except Exception:
        pass
    return 64 * 1024 * 1024      # conservative default (v7x per-TC budget)


# ----------------------------------------------------------------------------
# Kernels
# ----------------------------------------------------------------------------

def _embed_onehot_kernel(idx_ref, table_ref, out_ref):
    """Vectorized gather: one-hot(idx) @ table on the MXU (no scalar loop).

    idx_ref:   VMEM (tile, 1) int32 block
    table_ref: VMEM (n_item, d_pad) — whole table, constant block index
    out_ref:   VMEM (tile, d_pad)
    """
    tile = out_ref.shape[0]
    n_item = table_ref.shape[0]
    iota = jax.lax.broadcasted_iota(jnp.int32, (tile, n_item), 1)
    onehot = (idx_ref[...] == iota).astype(table_ref.dtype)
    out_ref[...] = jnp.dot(
        onehot, table_ref[...], preferred_element_type=jnp.float32
    ).astype(out_ref.dtype)


def _embed_loop_kernel(idx_ref, table_hbm, out_ref, table_vmem, tbl_sem):
    """Large-vocab resident gather: single-buffered VMEM table + unrolled loop.

    idx_ref:    SMEM (n_pad,) int32 (scalar prefetch)
    table_hbm:  HBM ref (n_item, d_pad), memory_space=pl.ANY
    out_ref:    VMEM (tile, d_pad)
    table_vmem: VMEM scratch (n_item, d_pad)  -- exactly ONE copy of the table
    tbl_sem:    DMA semaphore
    """
    i = pl.program_id(0)
    tile = out_ref.shape[0]
    base = i * tile

    # Copy the table HBM -> VMEM exactly once (grid is "arbitrary", so step 0
    # runs first and the scratch persists across subsequent grid steps).
    @pl.when(i == 0)
    def _():
        cp = pltpu.make_async_copy(table_hbm, table_vmem, tbl_sem)
        cp.start()
        cp.wait()

    def body(j8, carry):
        j0 = pl.multiple_of(j8 * 8, 8)
        for r in range(8):                      # manual 8x unroll
            row = idx_ref[base + j0 + r]
            out_ref[pl.ds(j0 + r, 1), :] = table_vmem[pl.ds(row, 1), :]
        return carry

    lax.fori_loop(0, tile // 8, body, 0)


def _embed_dma_gather_kernel(idx_ref, table_hbm, out_ref, copy_sem):
    """Sparse / large-table gather: row DMAs straight from HBM, 8 in flight.

    idx_ref:   SMEM (n_pad,) int32 (scalar prefetch)
    table_hbm: HBM ref (n_item, d_pad), memory_space=pl.ANY
    out_ref:   VMEM (tile, d_pad)
    copy_sem:  DMA semaphores (_N_INFLIGHT,)
    """
    i = pl.program_id(0)
    tile = out_ref.shape[0]
    base = i * tile

    def start_row(j):
        row = idx_ref[base + j]
        pltpu.make_async_copy(
            table_hbm.at[pl.ds(row, 1), :],
            out_ref.at[pl.ds(j, 1), :],
            copy_sem.at[j % _N_INFLIGHT],
        ).start()

    def wait_row(j):
        # Same-shaped descriptor; only the semaphore slot + byte count matter.
        pltpu.make_async_copy(
            table_hbm.at[pl.ds(0, 1), :],
            out_ref.at[pl.ds(j, 1), :],
            copy_sem.at[j % _N_INFLIGHT],
        ).wait()

    # Prime the pipe (tile >= 8 is guaranteed by the wrapper).
    for j in range(_N_INFLIGHT):
        start_row(j)

    def body(j, carry):
        wait_row(j)

        @pl.when(j + _N_INFLIGHT < tile)
        def _():
            start_row(j + _N_INFLIGHT)

        return carry

    lax.fori_loop(0, tile, body, 0)


# ----------------------------------------------------------------------------
# Wrapper
# ----------------------------------------------------------------------------

def embedding_lookup(idx, table, *, method=None):
    """idx: integer array of any shape; table: (n_item, embed_dim).

    Returns idx.shape + (embed_dim,) with the same dtype as `table`.
    method: None (auto) | "onehot" | "loop" | "dma".
    """
    n_item, embed_dim = table.shape
    dtype = table.dtype
    itemsize = jnp.dtype(dtype).itemsize

    idx_shape = idx.shape
    idx_flat = idx.reshape(-1).astype(jnp.int32)
    n = int(idx_flat.shape[0])
    if n == 0:
        return jnp.zeros(idx_shape + (embed_dim,), dtype)

    # Safety clamp (PyTorch would raise on out-of-range ids; see TODO above).
    idx_flat = jnp.clip(idx_flat, 0, n_item - 1)

    # Lane-dense output: pad embed_dim up to a multiple of 128.
    d_pad = _round_up(embed_dim, 128)
    table_p = table if d_pad == embed_dim else jnp.pad(
        table, ((0, 0), (0, d_pad - embed_dim)))

    # dtype-aware sublane multiple (8 rows f32, 16 bf16, 32 int8).
    sub = max(8, 32 // itemsize)
    row_bytes = d_pad * itemsize

    # Tile sizing: aim for >=256 KiB output slabs, round to the sublane
    # multiple, cap to keep one-hot / VMEM footprints modest.
    tile = min(n, max(1, (256 * 1024) // row_bytes))
    tile = _round_up(max(tile, sub), sub)
    tile = min(tile, 1024)
    n_pad = _round_up(n, tile)
    if n_pad != n:
        idx_flat = jnp.pad(idx_flat, (0, n_pad - n))
    grid = n_pad // tile

    table_bytes = n_item * d_pad * itemsize
    lookup_bytes = n * row_bytes
    out_buf_bytes = 2 * tile * row_bytes            # double-buffered output blocks
    slack = 2 * 1024 * 1024

    cap = _vmem_capacity_bytes()
    budget = int(0.75 * cap)

    onehot_needed = (2 * table_bytes + out_buf_bytes
                     + tile * n_item * (8 + itemsize) + slack)
    loop_needed = table_bytes + out_buf_bytes + slack
    dma_needed = out_buf_bytes + slack

    if method is None:
        sparse = 4 * lookup_bytes < table_bytes     # lookups read << whole table
        if sparse or loop_needed > budget:
            method = "dma"
        elif n_item <= _ONEHOT_MAX_ITEMS and onehot_needed <= budget:
            method = "onehot"
        else:
            method = "loop"

    def _vmem_limit(needed):
        return int(min(max(needed, 16 * 1024 * 1024), int(0.9 * cap)))

    if method == "onehot":
        if onehot_needed > budget:
            raise ValueError("onehot path does not fit in VMEM for this table")
        idx2d = idx_flat.reshape(n_pad, 1)
        # Table is small here (<= _ONEHOT_MAX_ITEMS rows), so the BlockSpec's
        # implicit double-buffer costs at most a couple of MiB; the big-table
        # case uses the explicitly single-buffered "loop" path instead.
        parallel = grid > 1 and lookup_bytes >= 2 * table_bytes
        dims = ("parallel",) if parallel else ("arbitrary",)
        cost = pl.CostEstimate(
            flops=2 * n_pad * n_item * d_pad,
            transcendentals=0,
            bytes_accessed=table_bytes + n_pad * row_bytes + n_pad * 4,
        )
        out_flat = pl.pallas_call(
            _embed_onehot_kernel,
            grid_spec=pltpu.PrefetchScalarGridSpec(
                num_scalar_prefetch=0,
                grid=(grid,),
                in_specs=[
                    pl.BlockSpec((tile, 1), lambda i: (i, 0)),
                    # Constant block index -> table DMA'd to VMEM once, reused.
                    pl.BlockSpec((n_item, d_pad), lambda i: (0, 0)),
                ],
                out_specs=pl.BlockSpec((tile, d_pad), lambda i: (i, 0)),
            ),
            out_shape=jax.ShapeDtypeStruct((n_pad, d_pad), dtype),
            compiler_params=pltpu.CompilerParams(
                dimension_semantics=dims,
                vmem_limit_bytes=_vmem_limit(onehot_needed),
            ),
            cost_estimate=cost,
        )(idx2d, table_p)

    elif method == "loop":
        if loop_needed > budget:
            raise ValueError("table does not fit in VMEM; use method='dma'")
        cost = pl.CostEstimate(
            flops=0, transcendentals=0,
            bytes_accessed=table_bytes + n_pad * row_bytes + n_pad * 4,
        )
        out_flat = pl.pallas_call(
            _embed_loop_kernel,
            grid_spec=pltpu.PrefetchScalarGridSpec(
                num_scalar_prefetch=1,
                grid=(grid,),
                in_specs=[pl.BlockSpec(memory_space=pl.ANY)],   # table stays in HBM
                out_specs=pl.BlockSpec((tile, d_pad), lambda i, idx_ref: (i, 0)),
                scratch_shapes=[
                    pltpu.VMEM((n_item, d_pad), dtype),  # single-buffered table
                    pltpu.SemaphoreType.DMA(()),
                ],
            ),
            out_shape=jax.ShapeDtypeStruct((n_pad, d_pad), dtype),
            compiler_params=pltpu.CompilerParams(
                # step-0 table copy must run first -> sequential grid
                dimension_semantics=("arbitrary",),
                vmem_limit_bytes=_vmem_limit(loop_needed),
            ),
            cost_estimate=cost,
        )(idx_flat, table_p)

    elif method == "dma":
        cost = pl.CostEstimate(
            flops=0, transcendentals=0,
            bytes_accessed=2 * n_pad * row_bytes + n_pad * 4,
        )
        out_flat = pl.pallas_call(
            _embed_dma_gather_kernel,
            grid_spec=pltpu.PrefetchScalarGridSpec(
                num_scalar_prefetch=1,
                grid=(grid,),
                in_specs=[pl.BlockSpec(memory_space=pl.ANY)],   # table stays in HBM
                out_specs=pl.BlockSpec((tile, d_pad), lambda i, idx_ref: (i, 0)),
                scratch_shapes=[pltpu.SemaphoreType.DMA((_N_INFLIGHT,))],
            ),
            out_shape=jax.ShapeDtypeStruct((n_pad, d_pad), dtype),
            compiler_params=pltpu.CompilerParams(
                # tiles are independent; table is shared read-only in HBM
                dimension_semantics=("parallel",),
                vmem_limit_bytes=_vmem_limit(dma_needed),
            ),
            cost_estimate=cost,
        )(idx_flat, table_p)

    else:
        raise ValueError(f"unknown method: {method!r}")

    out = out_flat[:n, :embed_dim]
    return out.reshape(idx_shape + (embed_dim,))


def make_embedding_table(key, n_item, embed_dim, dtype=jnp.float32):
    # nn.init.kaiming_normal_ on a (n_item, embed_dim) weight:
    # fan_in = embed_dim, gain = sqrt(2)  ->  std = sqrt(2 / embed_dim)
    std = (2.0 / embed_dim) ** 0.5
    return (jax.random.normal(key, (n_item, embed_dim)) * std).astype(dtype)


if __name__ == "__main__":
    key = jax.random.PRNGKey(0)
    k_tbl, k_idx = jax.random.split(key)

    n_item, embed_dim = 64, 128
    batch, seq = 2, 8

    table = make_embedding_table(k_tbl, n_item, embed_dim)
    idx = jax.random.randint(k_idx, (batch, seq), 0, n_item, dtype=jnp.int32)

    ref = jnp.take(table, idx.reshape(-1), axis=0).reshape(batch, seq, embed_dim)

    # Exercise the auto-dispatched path plus every explicit path.
    for method in (None, "onehot", "loop", "dma"):
        out = jax.block_until_ready(embedding_lookup(idx, table, method=method))
        assert out.shape == (batch, seq, embed_dim), (method, out.shape)
        assert jnp.allclose(out, ref, atol=1e-5, rtol=1e-5), \
            f"mismatch vs reference gather ({method})"

    print("KERNEL_OK")
</pallas_src>

<mosaic_0001>
module attributes {stable_mosaic.version = 11 : i64} {
  func.func @_embed_onehot_kernel(%arg0: i32, %arg1: memref<16x1xi32, #tpu.memory_space<vmem>>, %arg2: memref<64x128xf32, #tpu.memory_space<vmem>>, %arg3: memref<16x128xf32, #tpu.memory_space<vmem>>) attributes {dimension_semantics = [#tpu.dimension_semantics<arbitrary>], iteration_bounds = array<i64: 1>, scalar_prefetch = 0 : i64, scratch_operands = 0 : i64, tpu.core_type = #tpu.core_type<tc>, window_params = [{transform_indices = @transform_0, window_bounds = array<i64: 16, 1>}, {pipeline_mode = #tpu.pipeline_mode<synchronous>, transform_indices = @transform_1, window_bounds = array<i64: 64, 128>}, {transform_indices = @transform_2, window_bounds = array<i64: 16, 128>}]} {
    %0 = tpu.iota {dimensions = array<i32: 1>} : vector<16x64xi32>
    %c0 = arith.constant 0 : index
    %c0_0 = arith.constant 0 : index
    %1 = vector.load %arg1[%c0, %c0_0] : memref<16x1xi32, #tpu.memory_space<vmem>>, vector<16x1xi32>
    %2 = vector.broadcast %1 : vector<16x1xi32> to vector<16x64xi32>
    %3 = arith.cmpi eq, %2, %0 : vector<16x64xi32>
    %4 = arith.extui %3 : vector<16x64xi1> to vector<16x64xi32>
    %5 = arith.sitofp %4 : vector<16x64xi32> to vector<16x64xf32>
    %c0_1 = arith.constant 0 : index
    %c0_2 = arith.constant 0 : index
    %6 = vector.load %arg2[%c0_1, %c0_2] : memref<64x128xf32, #tpu.memory_space<vmem>>, vector<64x128xf32>
    %cst = arith.constant dense<0.000000e+00> : vector<16x128xf32>
    %7 = tpu.matmul %5, %6, %cst {dimension_numbers = #tpu.dot_dimension_numbers<[1], [0], [0], [1], [0, 0, 1, 1], [], []>} : vector<16x64xf32>, vector<64x128xf32>, vector<16x128xf32> -> vector<16x128xf32>
    %c0_3 = arith.constant 0 : index
    %c0_4 = arith.constant 0 : index
    %8 = vector.load %arg3[%c0_3, %c0_4] : memref<16x128xf32, #tpu.memory_space<vmem>>, vector<16x128xf32>
    tpu.vector_store %arg3[%c0_3, %c0_4], %7 {strides = array<i32>} : memref<16x128xf32, #tpu.memory_space<vmem>>, vector<16x128xf32>,
    return
  }
  func.func @transform_0(%arg0: i32) -> (i32, i32) {
    %c0_i32 = arith.constant 0 : i32
    %c0_i32_0 = arith.constant 0 : i32
    return %arg0, %c0_i32 : i32, i32
  }
  func.func @transform_1(%arg0: i32) -> (i32, i32) {
    %c0_i32 = arith.constant 0 : i32
    %c0_i32_0 = arith.constant 0 : i32
    %c0_i32_1 = arith.constant 0 : i32
    return %c0_i32, %c0_i32_0 : i32, i32
  }
  func.func @transform_2(%arg0: i32) -> (i32, i32) {
    %c0_i32 = arith.constant 0 : i32
    %c0_i32_0 = arith.constant 0 : i32
    return %arg0, %c0_i32 : i32, i32
  }
}

</mosaic_0001>

<bundles_post_ra>
// kernel: tpu_custom_call.1
= control target key start
LH: loop header
LB: loop body
LE: loop exit
PB: predicated region body
PF: predicated region fallthrough
CT: control target
= control target key end

     0   :  { %7 = vsyncpa [#allocation3], 0  ;;  %s312_s0 = inlined_call_operand.vmem [shape: s32[16,1], index: 0, kind: input, shape index: {}]   ;;  %s313_s1 = inlined_call_operand.hbm [shape: f32[64,128], index: 1, kind: input, shape index: {}]   ;;  %s314_s2 = inlined_call_operand.hbm [shape: f32[16,128], index: 2, kind: output, shape index: {}]  }
   0x1   :  { %8 = vsyncpa [#allocation4], 0  ;;  %s255_s9 = smov [#allocation2]   ;;  %s207_s13 = scalar_lea.hbm %s313_s1, 1024 }
   0x2   :  { %s16_s10 = sshll.u32 %s255_s9, 4  ;;  %p208_p0 = scmp.ne.s32.totalorder %s313_s1, %s207_s13  ;;  %s17_s10 = int_to_ptr.vmem [resolvable:$true] %s16_s10 }
   0x3   :  { %p211_p1 = scmp.lt.u32.totalorder %s207_s13, %s313_s1 }
   0x5   :  { %p213_p2 = pnand %p211_p1, %p208_p0 }
   0x7   :  { %216 = shalt.err (!%p213_p2)
}
   0x8   :  { %s217_s18 = scalar_lea.vmem %s17_s10, 1024  ;;  %p222_p4 = scmp.lt.s32.totalorder %s17_s10, %s17_s10 }
   0x9   :  { %p218_p3 = scmp.ne.s32.totalorder %s17_s10, %s217_s18  ;;  %p223_p5 = scmp.lt.s32.totalorder %s217_s18, %s217_s18 }
   0xb   :  { %p224_p6 = por %p223_p5, %p222_p4 }
   0xd   :  { %p225_p7 = pnand %p224_p6, %p218_p3 }
   0xf   :  { %228 = shalt.err (!%p225_p7)
}
  0x10   :  { %s256_s19 = smov 128   ;;  %s257_s20 = smov 8  }
  0x11   :  { %22 = dma.hbm_to_vmem [thread:$0]  %s313_s1, 1024, %s17_s10, [#allocation3], %s256_s19, %s256_s19, %s257_s20  }
  0x12   :  { %251 = dma.done.wait [#allocation3], 1024  }
  0x13   :  { %252 = vsyncadd [#allocation3], 4294966272  ;;  %v258_v0 = vmov 0   ;;  %v28_v1 = vld [vmem:[%s312_s0] sm:$0xff]  ;;  %v43_v3 = vld [vmem:[#allocation2 + $0x8] sm:$0xff]  ;;  %v26_v15 = vlaneseq  ;;  %vm50_vm0 = vcmask 523264  }
  0x14   :  { %206 = vset.pattern.permute.xlu0 %v258_v0  ;;  %v42_v2 = vld [vmem:[#allocation2] sm:$0xff]  ;;  %v44_v4 = vld [vmem:[#allocation2 + $0x10] sm:$0xff]  ;;  %v45_v5 = vld [vmem:[#allocation2 + $0x18] sm:$0xff]  ;;  %v259_v18 = vmov 0.0  }
  0x15   :  { %31 = vperm.xlu0 %206, %v28_v1   ;;  %v29_v6 = vld [vmem:[%s312_s0 + $0x8] sm:$0xff]  ;;  %v184_v7 = vpack.c.bf16 %v43_v3, %v42_v2  ;;  %v188_v8 = vpack.c.bf16 %v45_v5, %v44_v4  ;;  %v46_v9 = vld [vmem:[#allocation2 + $0x20] sm:$0xff]  ;;  %v48_v12 = vld [vmem:[#allocation2 + $0x30] sm:$0xff]  ;;  %v27_v16 = vand.u32 127, %v26_v15  ;;  %s260_s0 = smov [#allocation5]  }
  0x16   :  { %v47_v10 = vld [vmem:[#allocation2 + $0x28] sm:$0xff]  ;;  %v49_v13 = vld [vmem:[#allocation2 + $0x38] sm:$0xff]  ;;  %s139_s1 = sshll.u32 %s260_s0, 4  ;;  %s140_s1 = int_to_ptr.vmem [resolvable:$true] %s139_s1 }
  0x17   :  { %185 = vmatprep.subr.bf16.mxu0 %v184_v7  ;;  %v192_v11 = vpack.c.bf16 %v47_v10, %v46_v9  ;;  %v196_v14 = vpack.c.bf16 %v49_v13, %v48_v12  ;;  %s229_s27 = scalar_lea.vmem %s140_s1, 256  ;;  %p234_p9 = scmp.lt.s32.totalorder %s140_s1, %s140_s1 }
  0x18   :  { %187 = vmatpush3.bf16.msra.mxu0 %v184_v7  ;;  %p230_p8 = scmp.ne.s32.totalorder %s140_s1, %s229_s27  ;;  %p235_p10 = scmp.lt.s32.totalorder %s229_s27, %s229_s27 }
  0x19   :  { %34 = vperm.xlu0 %206, %v29_v6   ;;  %189 = vmatprep.subr.bf16.mxu0 %v188_v8 }
  0x1a   :  { %p236_p11 = por %p235_p10, %p234_p9 }
  0x1c   :  { %191 = vmatpush3.bf16.msra.mxu0 %v188_v8  ;;  %p237_p12 = pnand %p236_p11, %p230_p8 }
  0x1d   :  { %193 = vmatprep.subr.bf16.mxu0 %v192_v11 }
  0x20   :  { %195 = vmatpush3.bf16.msra.mxu0 %v192_v11 }
  0x21   :  { %197 = vmatprep.subr.bf16.mxu0 %v196_v14 }
  0x24   :  { %199 = vmatpush3.bf16.msra.mxu0 %v196_v14 }
  0x94   :  { %v32_v17 = vpop.permute.xlu0 %31 }
  0x95   :  { %vm36_vm1 = vcmp.eq.s32.totalorder %v32_v17, %v27_v16 }
  0x96   :  { %v151_v19 = vsel %vm36_vm1, 1.0, %v259_v18 }
  0x97   :  { %181 = vmatprep.mubr.msk.f32.mxu0 %vm50_vm0, %v151_v19 }
  0x98   :  { %v35_v20 = vpop.permute.xlu0 %34 }
  0x99   :  { %vm37_vm2 = vcmp.eq.s32.totalorder %v35_v20, %v27_v16 }
  0x9a   :  { %v152_v21 = vsel %vm37_vm2, 1.0, %v259_v18 }
  0x9b   :  { %182 = vmatmul.mubr.msk.f32.vlgmr.msra.gmra.mrb[0].mxu0 %vm50_vm0, %v152_v21 }
 0x16e   :  { %v183_v22 = vpop.f32.mrb[0].mxu0 }
 0x16f   :  { %133 = vst [vmem:[#allocation5 + $0x8] sm:$0xff] %v183_v22  ;;  %v123_v23 = vpop.f32.mrb[1].mxu0 }
 0x170   :  { %132 = vst [vmem:[#allocation5] sm:$0xff] %v123_v23 }
 0x171   :  { %240 = shalt.err (!%p237_p12)
}
 0x172   :  { %s241_s30 = scalar_lea.hbm %s314_s2, 256 }
 0x173   :  { %p242_p13 = scmp.ne.s32.totalorder %s314_s2, %s241_s30  ;;  %p245_p0 = scmp.lt.u32.totalorder %s241_s30, %s314_s2 }
 0x175   :  { %p247_p1 = pnand %p245_p0, %p242_p13 }
 0x177   :  { %250 = shalt.err (!%p247_p1)
}
 0x178   :  { %145 = dma.vmem_to_hbm [thread:$0]  %s140_s1, 256, %s314_s2, [#allocation4], %s256_s19, %s256_s19, %s257_s20  }
 0x179   :  { %253 = dma.done.wait [#allocation4], 256  }
 0x17a   :  { %254 = vsyncadd [#allocation4], 4294967040 }
 0x17b   :  { %149 = vsyncpa [#allocation3], 1 }
 0x17c   :  { %150 = vsyncpa [#allocation4], 1 }

</bundles_post_ra>
